<compile_context>
chip_gen: v7x
topology: tpu7x:2x2x1
jax: 0.10.0
libtpu: 0.0.40
codegen_flags: <defaults>
</compile_context>

<pallas_src>
import math

import jax
import jax.numpy as jnp
from jax.experimental import pallas as pl
from jax.experimental.pallas import tpu as pltpu

HIDDEN = [100, 250, 500, 150, 50]
OUT_FEATURES = 2
BN_EPS = 1e-5
LANE = 128


def _round_up(n, m):
    return (n + m - 1) // m * m


def andorzoo_fc_kernel(x_ref,
                       w1_ref, w2_ref, w3_ref, w4_ref, w5_ref, w6_ref,
                       b1_ref, b2_ref, b3_ref, b4_ref, b5_ref,
                       o_ref):
    """One batch-tile of the fused MLP. Weights / BN shifts are VMEM-resident."""
    h = x_ref[...]                                   # (TB, K) bf16, unpadded K

    def lin_shift_relu(h, w_ref, shift_ref):
        # Linear (BN scale already folded into W) on the MXU with f32
        # accumulation, then folded-BN shift and ReLU in f32 on the VPU.
        # TODO(synk): training-mode dropout / batch-stat BN not implemented
        # (eval-mode semantics: dropout = identity, BN = running stats).
        y = jnp.dot(h.astype(w_ref.dtype), w_ref[...],
                    preferred_element_type=jnp.float32)
        return jnp.maximum(y + shift_ref[...], 0.0)

    h = lin_shift_relu(h, w1_ref, b1_ref)
    h = lin_shift_relu(h, w2_ref, b2_ref)
    h = lin_shift_relu(h, w3_ref, b3_ref)
    h = lin_shift_relu(h, w4_ref, b4_ref)
    h = lin_shift_relu(h, w5_ref, b5_ref)

    # Classifier head: hidden6 only (no activation; softmax=False default).
    # Stored lane-dense (128 wide, unmasked vst) in bf16; wrapper slices [:, :2].
    # TODO(synk): softmax=True branch (torch.softmax + squeeze) not implemented.
    y = jnp.dot(h.astype(w6_ref.dtype), w6_ref[...],
                preferred_element_type=jnp.float32)
    o_ref[...] = y.astype(o_ref.dtype)


def kaiming_uniform_relu(key, out_features, in_features):
    """torch.nn.init.kaiming_uniform_(w, nonlinearity='relu') for (out, in)."""
    gain = math.sqrt(2.0)
    bound = gain * math.sqrt(3.0 / in_features)
    return jax.random.uniform(key, (out_features, in_features),
                              minval=-bound, maxval=bound, dtype=jnp.float32)


def init_params(inputsize, key, param_dtype=jnp.bfloat16):
    """Build BN-folded, transposed (in, out) weights + BN shift rows.

    Layer output dims are zero-padded to multiples of 128 lanes (exact through
    matmul + zero shift + ReLU); the first layer keeps its real contraction
    width `inputsize` so x can be streamed unpadded.
    """
    sizes = [inputsize] + HIDDEN + [OUT_FEATURES]
    in_dims = [inputsize] + [_round_up(s, LANE) for s in HIDDEN]
    out_dims = [_round_up(s, LANE) for s in HIDDEN + [OUT_FEATURES]]
    keys = jax.random.split(key, 6)

    weights, shifts = [], []
    for i in range(6):
        n_in, n_out = sizes[i], sizes[i + 1]
        w = kaiming_uniform_relu(keys[i], n_out, n_in)       # (out, in)
        w_t = w.T                                            # (in, out)
        if i < 5:
            # BatchNorm1d eval-mode affine at init: gamma=1, beta=0,
            # running_mean=0, running_var=1.
            gamma = jnp.ones((n_out,), jnp.float32)
            beta = jnp.zeros((n_out,), jnp.float32)
            mean = jnp.zeros((n_out,), jnp.float32)
            var = jnp.ones((n_out,), jnp.float32)
            scale = gamma / jnp.sqrt(var + BN_EPS)
            shift = beta - mean * scale
            # Fold BN scale into the weight columns (exact, done in f32).
            w_t = w_t * scale[None, :]
            # Zero shift on padded lanes keeps them 0 through ReLU.
            shift_pad = jnp.zeros((1, out_dims[i]), jnp.float32)
            shift_pad = shift_pad.at[0, :n_out].set(shift)
            shifts.append(shift_pad)
        # Zero-pad to (in_dim_i, out_pad_i); exact through matmul.
        w_pad = jnp.zeros((in_dims[i], out_dims[i]), jnp.float32)
        w_pad = w_pad.at[:n_in, :n_out].set(w_t)
        weights.append(w_pad.astype(param_dtype))

    return weights, shifts


def _choose_tile(B, K, out_pad, block_batch):
    """Batch tile with >= 2 even grid steps, tight tail padding, VMEM cap."""
    # VMEM-aware cap (double-buffered x/out tiles + f32 activation temps),
    # leaving headroom under the 32 MiB scoped limit.
    budget = 24 * 1024 * 1024
    per_row = 2 * (K * 2) + 2 * (out_pad * 2) + 6 * 1024
    cap = max(8, (budget // per_row) // 8 * 8)
    bb = max(8, min(block_batch, cap))

    n_steps = max(2, pl.cdiv(B, bb))
    if n_steps % 2:
        n_steps += 1                       # even step count -> balanced megacore
    TB = _round_up(pl.cdiv(B, n_steps), 8)
    return TB, n_steps


def andorzoo_fc_forward(x, weights, shifts, *, block_batch=1024):
    """Pallas forward. x: (B, inputsize) -> (B, 2) float32."""
    B, K = x.shape
    assert K == weights[0].shape[0], "inputsize mismatch with params"
    out_pad = weights[-1].shape[1]

    TB, n_steps = _choose_tile(B, K, out_pad, block_batch)
    B_pad = TB * n_steps

    # Stream x in bf16 (it is cast to bf16 for the first matmul anyway) with
    # its real feature width; only pad the batch dim to the tile multiple.
    x_bf = x.astype(jnp.bfloat16)
    if B_pad != B:
        x_bf = jnp.pad(x_bf, ((0, B_pad - B), (0, 0)))

    w_specs = [pl.BlockSpec(w.shape, lambda i: (0, 0)) for w in weights]
    s_specs = [pl.BlockSpec(s.shape, lambda i: (0, 0)) for s in shifts]

    flops = 2 * B_pad * sum(int(w.shape[0]) * int(w.shape[1]) for w in weights)
    bytes_accessed = (B_pad * K * 2 + B_pad * out_pad * 2
                      + sum(int(w.size) * 2 for w in weights)
                      + sum(int(s.size) * 4 for s in shifts))
    cost = pl.CostEstimate(flops=flops, transcendentals=0,
                           bytes_accessed=bytes_accessed)

    out = pl.pallas_call(
        andorzoo_fc_kernel,
        out_shape=jax.ShapeDtypeStruct((B_pad, out_pad), jnp.bfloat16),
        grid=(n_steps,),
        in_specs=[pl.BlockSpec((TB, K), lambda i: (i, 0))]
                 + w_specs + s_specs,
        out_specs=pl.BlockSpec((TB, out_pad), lambda i: (i, 0)),
        compiler_params=pltpu.CompilerParams(
            dimension_semantics=("parallel",),
            vmem_limit_bytes=32 * 1024 * 1024),
        cost_estimate=cost,
    )(x_bf, *weights, *shifts)

    return out[:B, :OUT_FEATURES].astype(jnp.float32)


def reference_forward(x, weights, shifts):
    """Pure-JAX reference of the same bf16-weight / bf16-head eval forward."""
    h = x.astype(jnp.bfloat16)
    for i in range(5):
        y = jnp.dot(h.astype(weights[i].dtype), weights[i],
                    preferred_element_type=jnp.float32)
        h = jnp.maximum(y + shifts[i], 0.0)
    y = jnp.dot(h.astype(weights[5].dtype), weights[5],
                preferred_element_type=jnp.float32)
    return y.astype(jnp.bfloat16).astype(jnp.float32)[:, :OUT_FEATURES]


if __name__ == "__main__":
    key = jax.random.PRNGKey(0)
    k_x, k_w = jax.random.split(key)

    batch = 16
    inputsize = 32
    x = jax.random.normal(k_x, (batch, inputsize), dtype=jnp.float32)

    weights, shifts = init_params(inputsize, k_w)

    out = andorzoo_fc_forward(x, weights, shifts)
    out = jax.block_until_ready(out)

    ref = reference_forward(x, weights, shifts)
    assert out.shape == (batch, OUT_FEATURES)
    assert jnp.allclose(out, ref, atol=1e-2, rtol=1e-2), (
        f"max abs diff = {jnp.max(jnp.abs(out - ref))}")

    print("KERNEL_OK")
</pallas_src>

<mosaic_0001>
module attributes {stable_mosaic.version = 11 : i64} {
  func.func @andorzoo_fc_kernel(%arg0: i32, %arg1: memref<8x32xbf16, #tpu.memory_space<vmem>>, %arg2: memref<32x128xbf16, #tpu.memory_space<vmem>>, %arg3: memref<128x256xbf16, #tpu.memory_space<vmem>>, %arg4: memref<256x512xbf16, #tpu.memory_space<vmem>>, %arg5: memref<512x256xbf16, #tpu.memory_space<vmem>>, %arg6: memref<256x128xbf16, #tpu.memory_space<vmem>>, %arg7: memref<128x128xbf16, #tpu.memory_space<vmem>>, %arg8: memref<1x128xf32, #tpu.memory_space<vmem>>, %arg9: memref<1x256xf32, #tpu.memory_space<vmem>>, %arg10: memref<1x512xf32, #tpu.memory_space<vmem>>, %arg11: memref<1x256xf32, #tpu.memory_space<vmem>>, %arg12: memref<1x128xf32, #tpu.memory_space<vmem>>, %arg13: memref<8x128xbf16, #tpu.memory_space<vmem>>) attributes {dimension_semantics = [#tpu.dimension_semantics<parallel>], iteration_bounds = array<i64: 2>, scalar_prefetch = 0 : i64, scratch_operands = 0 : i64, tpu.core_type = #tpu.core_type<tc>, window_params = [{transform_indices = @transform_0, window_bounds = array<i64: 8, 32>}, {pipeline_mode = #tpu.pipeline_mode<synchronous>, transform_indices = @transform_1, window_bounds = array<i64: 32, 128>}, {pipeline_mode = #tpu.pipeline_mode<synchronous>, transform_indices = @transform_2, window_bounds = array<i64: 128, 256>}, {pipeline_mode = #tpu.pipeline_mode<synchronous>, transform_indices = @transform_3, window_bounds = array<i64: 256, 512>}, {pipeline_mode = #tpu.pipeline_mode<synchronous>, transform_indices = @transform_4, window_bounds = array<i64: 512, 256>}, {pipeline_mode = #tpu.pipeline_mode<synchronous>, transform_indices = @transform_5, window_bounds = array<i64: 256, 128>}, {pipeline_mode = #tpu.pipeline_mode<synchronous>, transform_indices = @transform_6, window_bounds = array<i64: 128, 128>}, {pipeline_mode = #tpu.pipeline_mode<synchronous>, transform_indices = @transform_7, window_bounds = array<i64: 1, 128>}, {pipeline_mode = #tpu.pipeline_mode<synchronous>, transform_indices = @transform_8, window_bounds = array<i64: 1, 256>}, {pipeline_mode = #tpu.pipeline_mode<synchronous>, transform_indices = @transform_9, window_bounds = array<i64: 1, 512>}, {pipeline_mode = #tpu.pipeline_mode<synchronous>, transform_indices = @transform_10, window_bounds = array<i64: 1, 256>}, {pipeline_mode = #tpu.pipeline_mode<synchronous>, transform_indices = @transform_11, window_bounds = array<i64: 1, 128>}, {transform_indices = @transform_12, window_bounds = array<i64: 8, 128>}]} {
    %c0 = arith.constant 0 : index
    %c0_0 = arith.constant 0 : index
    %0 = vector.load %arg1[%c0, %c0_0] : memref<8x32xbf16, #tpu.memory_space<vmem>>, vector<8x32xbf16>
    %c0_1 = arith.constant 0 : index
    %c0_2 = arith.constant 0 : index
    %1 = vector.load %arg2[%c0_1, %c0_2] : memref<32x128xbf16, #tpu.memory_space<vmem>>, vector<32x128xbf16>
    %cst = arith.constant dense<0.000000e+00> : vector<8x128xf32>
    %2 = tpu.matmul %0, %1, %cst {dimension_numbers = #tpu.dot_dimension_numbers<[1], [0], [0], [1], [0, 0, 1, 1], [], []>} : vector<8x32xbf16>, vector<32x128xbf16>, vector<8x128xf32> -> vector<8x128xf32>
    %c0_3 = arith.constant 0 : index
    %c0_4 = arith.constant 0 : index
    %3 = vector.load %arg8[%c0_3, %c0_4] : memref<1x128xf32, #tpu.memory_space<vmem>>, vector<1x128xf32>
    %4 = vector.broadcast %3 : vector<1x128xf32> to vector<8x128xf32>
    %5 = arith.addf %2, %4 : vector<8x128xf32>
    %cst_5 = arith.constant 0.000000e+00 : f32
    %6 = vector.broadcast %cst_5 : f32 to vector<8x128xf32>
    %7 = arith.maximumf %5, %6 : vector<8x128xf32>
    %8 = arith.truncf %7 : vector<8x128xf32> to vector<8x128xbf16>
    %c0_6 = arith.constant 0 : index
    %c0_7 = arith.constant 0 : index
    %9 = vector.load %arg3[%c0_6, %c0_7] : memref<128x256xbf16, #tpu.memory_space<vmem>>, vector<128x256xbf16>
    %cst_8 = arith.constant dense<0.000000e+00> : vector<8x256xf32>
    %10 = tpu.matmul %8, %9, %cst_8 {dimension_numbers = #tpu.dot_dimension_numbers<[1], [0], [0], [1], [0, 0, 1, 1], [], []>} : vector<8x128xbf16>, vector<128x256xbf16>, vector<8x256xf32> -> vector<8x256xf32>
    %c0_9 = arith.constant 0 : index
    %c0_10 = arith.constant 0 : index
    %11 = vector.load %arg9[%c0_9, %c0_10] : memref<1x256xf32, #tpu.memory_space<vmem>>, vector<1x256xf32>
    %12 = vector.broadcast %11 : vector<1x256xf32> to vector<8x256xf32>
    %13 = arith.addf %10, %12 : vector<8x256xf32>
    %cst_11 = arith.constant 0.000000e+00 : f32
    %14 = vector.broadcast %cst_11 : f32 to vector<8x256xf32>
    %15 = arith.maximumf %13, %14 : vector<8x256xf32>
    %16 = arith.truncf %15 : vector<8x256xf32> to vector<8x256xbf16>
    %c0_12 = arith.constant 0 : index
    %c0_13 = arith.constant 0 : index
    %17 = vector.load %arg4[%c0_12, %c0_13] : memref<256x512xbf16, #tpu.memory_space<vmem>>, vector<256x512xbf16>
    %cst_14 = arith.constant dense<0.000000e+00> : vector<8x512xf32>
    %18 = tpu.matmul %16, %17, %cst_14 {dimension_numbers = #tpu.dot_dimension_numbers<[1], [0], [0], [1], [0, 0, 1, 1], [], []>} : vector<8x256xbf16>, vector<256x512xbf16>, vector<8x512xf32> -> vector<8x512xf32>
    %c0_15 = arith.constant 0 : index
    %c0_16 = arith.constant 0 : index
    %19 = vector.load %arg10[%c0_15, %c0_16] : memref<1x512xf32, #tpu.memory_space<vmem>>, vector<1x512xf32>
    %20 = vector.broadcast %19 : vector<1x512xf32> to vector<8x512xf32>
    %21 = arith.addf %18, %20 : vector<8x512xf32>
    %cst_17 = arith.constant 0.000000e+00 : f32
    %22 = vector.broadcast %cst_17 : f32 to vector<8x512xf32>
    %23 = arith.maximumf %21, %22 : vector<8x512xf32>
    %24 = arith.truncf %23 : vector<8x512xf32> to vector<8x512xbf16>
    %c0_18 = arith.constant 0 : index
    %c0_19 = arith.constant 0 : index
    %25 = vector.load %arg5[%c0_18, %c0_19] : memref<512x256xbf16, #tpu.memory_space<vmem>>, vector<512x256xbf16>
    %cst_20 = arith.constant dense<0.000000e+00> : vector<8x256xf32>
    %26 = tpu.matmul %24, %25, %cst_20 {dimension_numbers = #tpu.dot_dimension_numbers<[1], [0], [0], [1], [0, 0, 1, 1], [], []>} : vector<8x512xbf16>, vector<512x256xbf16>, vector<8x256xf32> -> vector<8x256xf32>
    %c0_21 = arith.constant 0 : index
    %c0_22 = arith.constant 0 : index
    %27 = vector.load %arg11[%c0_21, %c0_22] : memref<1x256xf32, #tpu.memory_space<vmem>>, vector<1x256xf32>
    %28 = vector.broadcast %27 : vector<1x256xf32> to vector<8x256xf32>
    %29 = arith.addf %26, %28 : vector<8x256xf32>
    %cst_23 = arith.constant 0.000000e+00 : f32
    %30 = vector.broadcast %cst_23 : f32 to vector<8x256xf32>
    %31 = arith.maximumf %29, %30 : vector<8x256xf32>
    %32 = arith.truncf %31 : vector<8x256xf32> to vector<8x256xbf16>
    %c0_24 = arith.constant 0 : index
    %c0_25 = arith.constant 0 : index
    %33 = vector.load %arg6[%c0_24, %c0_25] : memref<256x128xbf16, #tpu.memory_space<vmem>>, vector<256x128xbf16>
    %cst_26 = arith.constant dense<0.000000e+00> : vector<8x128xf32>
    %34 = tpu.matmul %32, %33, %cst_26 {dimension_numbers = #tpu.dot_dimension_numbers<[1], [0], [0], [1], [0, 0, 1, 1], [], []>} : vector<8x256xbf16>, vector<256x128xbf16>, vector<8x128xf32> -> vector<8x128xf32>
    %c0_27 = arith.constant 0 : index
    %c0_28 = arith.constant 0 : index
    %35 = vector.load %arg12[%c0_27, %c0_28] : memref<1x128xf32, #tpu.memory_space<vmem>>, vector<1x128xf32>
    %36 = vector.broadcast %35 : vector<1x128xf32> to vector<8x128xf32>
    %37 = arith.addf %34, %36 : vector<8x128xf32>
    %cst_29 = arith.constant 0.000000e+00 : f32
    %38 = vector.broadcast %cst_29 : f32 to vector<8x128xf32>
    %39 = arith.maximumf %37, %38 : vector<8x128xf32>
    %40 = arith.truncf %39 : vector<8x128xf32> to vector<8x128xbf16>
    %c0_30 = arith.constant 0 : index
    %c0_31 = arith.constant 0 : index
    %41 = vector.load %arg7[%c0_30, %c0_31] : memref<128x128xbf16, #tpu.memory_space<vmem>>, vector<128x128xbf16>
    %cst_32 = arith.constant dense<0.000000e+00> : vector<8x128xf32>
    %42 = tpu.matmul %40, %41, %cst_32 {dimension_numbers = #tpu.dot_dimension_numbers<[1], [0], [0], [1], [0, 0, 1, 1], [], []>} : vector<8x128xbf16>, vector<128x128xbf16>, vector<8x128xf32> -> vector<8x128xf32>
    %43 = arith.truncf %42 : vector<8x128xf32> to vector<8x128xbf16>
    %c0_33 = arith.constant 0 : index
    %c0_34 = arith.constant 0 : index
    %44 = vector.load %arg13[%c0_33, %c0_34] : memref<8x128xbf16, #tpu.memory_space<vmem>>, vector<8x128xbf16>
    tpu.vector_store %arg13[%c0_33, %c0_34], %43 {strides = array<i32>} : memref<8x128xbf16, #tpu.memory_space<vmem>>, vector<8x128xbf16>,
    return
  }
  func.func @transform_0(%arg0: i32) -> (i32, i32) {
    %c0_i32 = arith.constant 0 : i32
    %c0_i32_0 = arith.constant 0 : i32
    return %arg0, %c0_i32 : i32, i32
  }
  func.func @transform_1(%arg0: i32) -> (i32, i32) {
    %c0_i32 = arith.constant 0 : i32
    %c0_i32_0 = arith.constant 0 : i32
    %c0_i32_1 = arith.constant 0 : i32
    return %c0_i32, %c0_i32_0 : i32, i32
  }
  func.func @transform_2(%arg0: i32) -> (i32, i32) {
    %c0_i32 = arith.constant 0 : i32
    %c0_i32_0 = arith.constant 0 : i32
    %c0_i32_1 = arith.constant 0 : i32
    return %c0_i32, %c0_i32_0 : i32, i32
  }
  func.func @transform_3(%arg0: i32) -> (i32, i32) {
    %c0_i32 = arith.constant 0 : i32
    %c0_i32_0 = arith.constant 0 : i32
    %c0_i32_1 = arith.constant 0 : i32
    return %c0_i32, %c0_i32_0 : i32, i32
  }
  func.func @transform_4(%arg0: i32) -> (i32, i32) {
    %c0_i32 = arith.constant 0 : i32
    %c0_i32_0 = arith.constant 0 : i32
    %c0_i32_1 = arith.constant 0 : i32
    return %c0_i32, %c0_i32_0 : i32, i32
  }
  func.func @transform_5(%arg0: i32) -> (i32, i32) {
    %c0_i32 = arith.constant 0 : i32
    %c0_i32_0 = arith.constant 0 : i32
    %c0_i32_1 = arith.constant 0 : i32
    return %c0_i32, %c0_i32_0 : i32, i32
  }
  func.func @transform_6(%arg0: i32) -> (i32, i32) {
    %c0_i32 = arith.constant 0 : i32
    %c0_i32_0 = arith.constant 0 : i32
    %c0_i32_1 = arith.constant 0 : i32
    return %c0_i32, %c0_i32_0 : i32, i32
  }
  func.func @transform_7(%arg0: i32) -> (i32, i32) {
    %c0_i32 = arith.constant 0 : i32
    %c0_i32_0 = arith.constant 0 : i32
    %c0_i32_1 = arith.constant 0 : i32
    return %c0_i32, %c0_i32_0 : i32, i32
  }
  func.func @transform_8(%arg0: i32) -> (i32, i32) {
    %c0_i32 = arith.constant 0 : i32
    %c0_i32_0 = arith.constant 0 : i32
    %c0_i32_1 = arith.constant 0 : i32
    return %c0_i32, %c0_i32_0 : i32, i32
  }
  func.func @transform_9(%arg0: i32) -> (i32, i32) {
    %c0_i32 = arith.constant 0 : i32
    %c0_i32_0 = arith.constant 0 : i32
    %c0_i32_1 = arith.constant 0 : i32
    return %c0_i32, %c0_i32_0 : i32, i32
  }
  func.func @transform_10(%arg0: i32) -> (i32, i32) {
    %c0_i32 = arith.constant 0 : i32
    %c0_i32_0 = arith.constant 0 : i32
    %c0_i32_1 = arith.constant 0 : i32
    return %c0_i32, %c0_i32_0 : i32, i32
  }
  func.func @transform_11(%arg0: i32) -> (i32, i32) {
    %c0_i32 = arith.constant 0 : i32
    %c0_i32_0 = arith.constant 0 : i32
    %c0_i32_1 = arith.constant 0 : i32
    return %c0_i32, %c0_i32_0 : i32, i32
  }
  func.func @transform_12(%arg0: i32) -> (i32, i32) {
    %c0_i32 = arith.constant 0 : i32
    %c0_i32_0 = arith.constant 0 : i32
    return %arg0, %c0_i32 : i32, i32
  }
}

</mosaic_0001>

<bundles_post_ra>
// kernel: tpu_custom_call.1
= control target key start
LH: loop header
LB: loop body
LE: loop exit
PB: predicated region body
PF: predicated region fallthrough
CT: control target
= control target key end

     0   :  { %s3515_s0 = inlined_call_operand.hbm [shape: bf16[16,32], index: 0, kind: input, shape index: {}]   ;;  %s3516_s1 = inlined_call_operand.hbm [shape: bf16[32,128], index: 1, kind: input, shape index: {}]   ;;  %s3517_s2 = inlined_call_operand.hbm [shape: bf16[128,256], index: 2, kind: input, shape index: {}]   ;;  %s3518_s3 = inlined_call_operand.hbm [shape: bf16[256,512], index: 3, kind: input, shape index: {}]   ;;  %s3519_s4 = inlined_call_operand.hbm [shape: bf16[512,256], index: 4, kind: input, shape index: {}]   ;;  %s3520_s5 = inlined_call_operand.hbm [shape: bf16[256,128], index: 5, kind: input, shape index: {}]   ;;  %s3521_s6 = inlined_call_operand.hbm [shape: bf16[128,128], index: 6, kind: input, shape index: {}]   ;;  %s3522_s7 = inlined_call_operand.vmem [shape: f32[1,128], index: 7, kind: input, shape index: {}]   ;;  %s3523_s8 = inlined_call_operand.vmem [shape: f32[1,256], index: 8, kind: input, shape index: {}]   ;;  %s3524_s9 = inlined_call_operand.vmem [shape: f32[1,512], index: 9, kind: input, shape index: {}]   ;;  %s3525_s10 = inlined_call_operand.vmem [shape: f32[1,256], index: 10, kind: input, shape index: {}]   ;;  %s3526_s11 = inlined_call_operand.vmem [shape: f32[1,128], index: 11, kind: input, shape index: {}]   ;;  %s3527_s12 = inlined_call_operand.hbm [shape: bf16[16,128], index: 12, kind: output, shape index: {}]  }
   0x1   :  { %3535 = sst [smem:[#allocation20_spill]] %s3516_s1 }
   0x2   :  { %3536 = sst [smem:[#allocation21_spill]] %s3524_s9 }
   0x3   :  { %3537 = sst [smem:[#allocation22_spill]] %s3525_s10 }
   0x4   :  { %3538 = sst [smem:[#allocation23_spill]] %s3526_s11 }
   0x5   :  { %3539 = sst [smem:[#allocation24_spill]] %s3527_s12 }
   0x6   :  { %17 = vsyncpa [#allocation3], 0 }
   0x7   :  { %19 = vsyncpa [#allocation3 + $0x1], 0 }
   0x8   :  { %20 = vsyncpa [#allocation6], 0 }
   0x9   :  { %21 = vsyncpa [#allocation9], 0 }
   0xa   :  { %22 = vsyncpa [#allocation12], 0 }
   0xb   :  { %23 = vsyncpa [#allocation4], 0 }
   0xc   :  { %25 = vsyncpa [#allocation4 + $0x1], 0  ;;  %s3125_s21 = smov 0   ;;  %s3127_s22 = smov 0  }
   0xd   :  { %s3129_s23 = smov 0   ;;  %s3131_s24 = smov 0  }
   0xe LB: > { %s3043_s25 = smov [#allocation5]   ;;  %s3146_s27 = sadd.s32 4294967295, %s3041_s24   ;;  %s3041_s24 = sphi %s3131_s24, %s3569_s24   ;;  %s3037_s23 = sphi %s3129_s23, %s3568_s23   ;;  %s3033_s22 = sphi %s3127_s22, %s3567_s22   ;;  %s3029_s21 = sphi %s3125_s21, %s3566_s21  }
   0xf   : > { %s331_s26 = sshll.u32 %s3043_s25, 4  ;;  %p2143_p0 = scmp.ge.s32.totalorder %s3041_s24, 1  ;;  %s3151_s26 = int_to_ptr.vmem [resolvable:$true] %s331_s26 }
  0x10   : > { %p3531_p1 = scmp.eq.s32.totalorder %s3146_s27, 0  ;;  %p319_p2 = scmp.lt.s32.totalorder %s3041_s24, 3 }
  0x11   : > { %s3044_s29 = smov [#allocation8]   ;;  %s3045_s14 = smov [#allocation11]  }
  0x12   : > { %p3153_p3 = pnand %p2143_p0, %p319_p2  ;;  %s357_s30 = sshll.u32 %s3044_s29, 4  ;;  %s3166_s30 = int_to_ptr.vmem [resolvable:$true] %s357_s30 }
  0x13   : > { %s3168_s15 = sshll.u32 %s3045_s14, 4  ;;  %s3542_s1 = sld [smem:[#allocation20_spill]]  ;;  %s384_s15 = int_to_ptr.vmem [resolvable:$true] %s3168_s15 }
  0x14   : > { %s3540_s28 = scalar_select %p3153_p3, 1, 0 }
  0x15   : > { %p2435_p5 = pneg %p3153_p3 }
  0x17   : > { %p3162_p6 = pnand %p2435_p5, %p3531_p1 }
  0x19   : > { %s2765_s18 = scalar_lea.hbm %s3542_s1, 256  ;;  %p3178_p8 = pneg %p3162_p6 }
  0x1a   : > { %p2766_p7 = scmp.ne.s32.totalorder %s3542_s1, %s2765_s18  ;;  %p2772_p11 = scmp.lt.u32.totalorder %s2765_s18, %s3542_s1 }
  0x1c   : > { %p2768_p9 = pnand %p3178_p8, %p2766_p7 }
  0x1e   : > { %p2769_p10 = pneg %p2768_p9 }
  0x20   : > { %p2774_p12 = pnand %p2772_p11, %p2769_p10 }
  0x22   : > { %2777 = shalt.err (!%p2774_p12)
}
  0x23   : > { %s2778_s16 = scalar_lea.vmem %s3151_s26, 256  ;;  %p2786_p5 = scmp.lt.s32.totalorder %s3151_s26, %s3151_s26 }
  0x24   : > { %p2779_p13 = scmp.ne.s32.totalorder %s3151_s26, %s2778_s16  ;;  %p2787_p4 = scmp.lt.s32.totalorder %s2778_s16, %s2778_s16 }
  0x26   : > { %p2781_p0 = pnand %p2779_p13, %p3178_p8  ;;  %p2788_p7 = por %p2787_p4, %p2786_p5 }
  0x28   : > { %p2782_p2 = pneg %p2781_p0 }
  0x2a   : > { %p2789_p9 = pnand %p2788_p7, %p2782_p2 }
  0x2c   : > { %2792 = shalt.err (!%p2789_p9)
}
  0x2d   : > { %s3529_s17 = smov 64   ;;  %s3533_s18 = smov 4  }
  0x2e   : > { %2438 = dma.hbm_to_vmem [thread:$0]  (!%p3162_p6), %s3542_s1, 256, %s3151_s26, [#allocation6], %s3529_s17, %s3529_s17, %s3533_s18  }
  0x2f   : > { %s2793_s16 = scalar_lea.hbm %s3518_s3, 8192 }
  0x30   : > { %p2794_p4 = scmp.ne.s32.totalorder %s3518_s3, %s2793_s16  ;;  %p2800_p12 = scmp.lt.u32.totalorder %s2793_s16, %s3518_s3 }
  0x32   : > { %p2796_p10 = pnand %p2794_p4, %p3178_p8 }
  0x34   : > { %p2797_p11 = pneg %p2796_p10 }
  0x36   : > { %p2802_p13 = pnand %p2800_p12, %p2797_p11 }
  0x38   : > { %2805 = shalt.err (!%p2802_p13)
}
  0x39   : > { %s2806_s26 = scalar_lea.vmem %s3166_s30, 8192  ;;  %p2814_p7 = scmp.lt.s32.totalorder %s3166_s30, %s3166_s30 }
  0x3a   : > { %p2807_p0 = scmp.ne.s32.totalorder %s3166_s30, %s2806_s26  ;;  %p2815_p9 = scmp.lt.s32.totalorder %s2806_s26, %s2806_s26 }
  0x3c   : > { %p2809_p2 = pnand %p2807_p0, %p3178_p8  ;;  %p2816_p4 = por %p2815_p9, %p2814_p7 }
  0x3e   : > { %p2810_p5 = pneg %p2809_p2 }
  0x40   : > { %p2817_p10 = pnand %p2816_p4, %p2810_p5 }
  0x42   : > { %2820 = shalt.err (!%p2817_p10)
}
  0x43   : > { %s3048_s11 = smov 256   ;;  %s3049_s9 = smov 16  }
  0x44   : > { %2444 = dma.hbm_to_vmem [thread:$0]  (!%p3162_p6), %s3518_s3, 8192, %s3166_s30, [#allocation9], %s3048_s11, %s3048_s11, %s3049_s9  }
  0x45   : > { %s2821_s29 = scalar_lea.hbm %s3520_s5, 2048 }
  0x46   : > { %p2822_p11 = scmp.ne.s32.totalorder %s3520_s5, %s2821_s29  ;;  %p2828_p0 = scmp.lt.u32.totalorder %s2821_s29, %s3520_s5 }
  0x48   : > { %p2824_p12 = pnand %p2822_p11, %p3178_p8 }
  0x4a   : > { %p2825_p13 = pneg %p2824_p12 }
  0x4c   : > { %p2830_p2 = pnand %p2828_p0, %p2825_p13 }
  0x4e   : > { %2833 = shalt.err (!%p2830_p2)
}
  0x4f   : > { %s2834_s10 = scalar_lea.vmem %s384_s15, 2048  ;;  %p2842_p4 = scmp.lt.s32.totalorder %s384_s15, %s384_s15 }
  0x50   : > { %p2835_p5 = scmp.ne.s32.totalorder %s384_s15, %s2834_s10  ;;  %p2843_p10 = scmp.lt.s32.totalorder %s2834_s10, %s2834_s10 }
  0x52   : > { %p2837_p7 = pnand %p2835_p5, %p3178_p8  ;;  %p2844_p1 = por %p2843_p10, %p2842_p4 }
  0x54   : > { %p2838_p9 = pneg %p2837_p7 }
  0x56   : > { %p2845_p3 = pnand %p2844_p1, %p2838_p9 }
  0x58   : > { %2848 = shalt.err (!%p2845_p3)
}
  0x59   : > { %s3544_s30 = smov 64   ;;  %s3050_s9 = smov [#allocation7]  }
  0x5a   : > { %2450 = dma.hbm_to_vmem [thread:$0]  (!%p3162_p6), %s3520_s5, 2048, %s384_s15, [#allocation12], %s3544_s30, %s3544_s30, %s3533_s18  }
  0x5b   : > { %s344_s12 = sshll.u32 %s3050_s9, 4  ;;  %s2849_s29 = scalar_lea.hbm %s3517_s2, 2048  ;;  %s345_s12 = int_to_ptr.vmem [resolvable:$true] %s344_s12 }
  0x5c   : > { %p2850_p1 = scmp.ne.s32.totalorder %s3517_s2, %s2849_s29  ;;  %p2856_p12 = scmp.lt.u32.totalorder %s2849_s29, %s3517_s2 }
  0x5e   : > { %p2852_p3 = pnand %p2850_p1, %p3178_p8 }
  0x60   : > { %p2853_p11 = pneg %p2852_p3 }
  0x62   : > { %p2858_p13 = pnand %p2856_p12, %p2853_p11 }
  0x64   : > { %2861 = shalt.err (!%p2858_p13)
}
  0x65   : > { %s2862_s15 = scalar_lea.vmem %s345_s12, 2048  ;;  %p2870_p7 = scmp.lt.s32.totalorder %s345_s12, %s345_s12 }
  0x66   : > { %p2863_p0 = scmp.ne.s32.totalorder %s345_s12, %s2862_s15  ;;  %p2871_p9 = scmp.lt.s32.totalorder %s2862_s15, %s2862_s15 }
  0x68   : > { %p2865_p2 = pnand %p2863_p0, %p3178_p8  ;;  %p2872_p4 = por %p2871_p9, %p2870_p7 }
  0x6a   : > { %p2866_p5 = pneg %p2865_p2 }
  0x6c   : > { %p2873_p10 = pnand %p2872_p4, %p2866_p5 }
  0x6e   : > { %2876 = shalt.err (!%p2873_p10)
}
  0x6f   : > { %s3051_s17 = smov 128   ;;  %s3052_s11 = smov 8  }
  0x70   : > { %2441 = dma.hbm_to_vmem [thread:$0]  (!%p3162_p6), %s3517_s2, 2048, %s345_s12, [#allocation6], %s3051_s17, %s3051_s17, %s3052_s11  }
  0x71   : > { %s3053_s20 = smov [#allocation10]   ;;  %s3054_s14 = smov [#allocation13]  }
  0x72   : > { %s370_s29 = sshll.u32 %s3053_s20, 4  ;;  %s396_s16 = sshll.u32 %s3054_s14, 4  ;;  %s371_s29 = int_to_ptr.vmem [resolvable:$true] %s370_s29  ;;  %s3265_s16 = int_to_ptr.vmem [resolvable:$true] %s396_s16 }
  0x73   : > { %s2877_s15 = scalar_lea.hbm %s3519_s4, 8192 }
  0x74   : > { %p2878_p1 = scmp.ne.s32.totalorder %s3519_s4, %s2877_s15  ;;  %p2884_p12 = scmp.lt.u32.totalorder %s2877_s15, %s3519_s4 }
  0x76   : > { %p2880_p3 = pnand %p2878_p1, %p3178_p8 }
  0x78   : > { %p2881_p11 = pneg %p2880_p3 }
  0x7a   : > { %p2886_p13 = pnand %p2884_p12, %p2881_p11 }
  0x7c   : > { %2889 = shalt.err (!%p2886_p13)
}
  0x7d   : > { %s2890_s19 = scalar_lea.vmem %s371_s29, 8192  ;;  %p2898_p7 = scmp.lt.s32.totalorder %s371_s29, %s371_s29 }
  0x7e   : > { %p2891_p0 = scmp.ne.s32.totalorder %s371_s29, %s2890_s19  ;;  %p2899_p9 = scmp.lt.s32.totalorder %s2890_s19, %s2890_s19 }
  0x80   : > { %p2893_p2 = pnand %p2891_p0, %p3178_p8  ;;  %p2900_p4 = por %p2899_p9, %p2898_p7 }
  0x82   : > { %p2894_p5 = pneg %p2893_p2 }
  0x84   : > { %p2901_p10 = pnand %p2900_p4, %p2894_p5 }
  0x86   : > { %2904 = shalt.err (!%p2901_p10)
}
  0x87   : > { %2447 = dma.hbm_to_vmem [thread:$0]  (!%p3162_p6), %s3519_s4, 8192, %s371_s29, [#allocation9], %s3051_s17, %s3051_s17, %s3052_s11  }
  0x88   : > { %s2905_s26 = scalar_lea.hbm %s3521_s6, 1024 }
  0x89   : > { %p2906_p1 = scmp.ne.s32.totalorder %s3521_s6, %s2905_s26  ;;  %p2912_p12 = scmp.lt.u32.totalorder %s2905_s26, %s3521_s6 }
  0x8b   : > { %p2908_p3 = pnand %p2906_p1, %p3178_p8 }
  0x8d   : > { %p2909_p11 = pneg %p2908_p3 }
  0x8f   : > { %p2914_p13 = pnand %p2912_p12, %p2909_p11 }
  0x91   : > { %2917 = shalt.err (!%p2914_p13)
}
  0x92   : > { %s2918_s17 = scalar_lea.vmem %s3265_s16, 1024  ;;  %p2926_p7 = scmp.lt.s32.totalorder %s3265_s16, %s3265_s16 }
  0x93   : > { %p2919_p0 = scmp.ne.s32.totalorder %s3265_s16, %s2918_s17  ;;  %p2927_p9 = scmp.lt.s32.totalorder %s2918_s17, %s2918_s17 }
  0x95   : > { %p2921_p2 = pnand %p2919_p0, %p3178_p8  ;;  %p2928_p4 = por %p2927_p9, %p2926_p7 }
  0x97   : > { %p2922_p5 = pneg %p2921_p2 }
  0x99   : > { %p2929_p10 = pnand %p2928_p4, %p2922_p5 }
  0x9b   : > { %2932 = shalt.err (!%p2929_p10)
}
  0x9c   : > { %s3545_s11 = smov 4   ;;  %s2142_s13 = sadd.s32 4294967294, %s3041_s24  }
  0x9d   : > { %2453 = dma.hbm_to_vmem [thread:$0]  (!%p3162_p6), %s3521_s6, 1024, %s3265_s16, [#allocation12], %s3544_s30, %s3544_s30, %s3545_s11  }
  0x9e   : > { %s3313_s25 = sadd.s32 1, %s3041_s24   ;;  %s38_s18 = sadd.s32 1, %s3037_s23 }
  0x9f   : > { %s35_s1 = ssub.s32 %s3041_s24, %s3313_s25  ;;  %p45_p1 = scmp.ne.s32.totalorder %s3037_s23, %s3033_s22 }
  0xa0   : > { %p36_p8 = scmp.eq.s32.totalorder %s35_s1, 0  ;;  %p46_p3 = scmp.eq.s32.totalorder %s3041_s24, 0 }
  0xa1   : > { %p51_p11 = scmp.ne.s32.totalorder %s3033_s22, %s3029_s21  ;;  %p3547_p13 = scmp.eq.s32.totalorder %s3146_s27, 0 }
  0xa2   : > { %s3324_s20 = scalar_select %p36_p8, %s3037_s23, %s38_s18  }
  0xa3   : > { %p3326_p12 = por %p46_p3, %p45_p1  ;;  %p3332_p6 = por %p3547_p13, %p51_p11 }
  0xa4   : > { %p306_p0 = scmp.eq.s32.totalorder %s3146_s27, 1  ;;  %p312_p2 = scmp.eq.s32.totalorder %s2142_s13, 1 }
  0xa5   : > { %p2468_p5 = scmp.lt.s32.totalorder %s3041_s24, 2  ;;  %s425_s16 = sand.u32 1, %s3037_s23  }
  0xa6   : > { %p3339_p7 = por %p306_p0, %p45_p1  ;;  %p3343_p9 = por %p312_p2, %p51_p11 }
  0xa7   : > { %s2151_s15 = sshll.u32 %s425_s16, 2  ;;  %s2152_s9 = sshll.u32 %s3041_s24, 6 }
  0xa8   : > { %s3549_s26 = scalar_select %p3339_p7, 1, 0 }
  0xa9   : > { %s3550_s10 = scalar_select %p3343_p9, 1, 0 }
  0xaa   : > { %s3351_s11 = scalar_lea.hbm %s3515_s0, %s2152_s9  ;;  %s429_s29 = scalar_lea.vmem [#allocation2], %s2151_s15 }
  0xab   : > { %s436_s19 = sshll.u32 %s429_s29, 4  ;;  %p3357_p4 = pnand %p2468_p5, %p3326_p12  ;;  %s3353_s19 = int_to_ptr.vmem [resolvable:$true] %s436_s19 }
  0xac   : > { %s426_s1 = scalar_lea.sflag [#allocation3], %s425_s16  ;;  %s2933_s18 = scalar_lea.hbm %s3351_s11, 64 }
  0xad   : > { %p2934_p10 = scmp.ne.s32.totalorder %s3351_s11, %s2933_s18  ;;  %p2935_p8 = pneg %p3357_p4 }
  0xae   : > { %s2938_s12 = scalar_lea.hbm %s3515_s0, 128  ;;  %p2939_p11 = scmp.lt.u32.totalorder %s3351_s11, %s3515_s0 }
  0xaf   : > { %p2936_p1 = pnand %p2935_p8, %p2934_p10  ;;  %p2940_p12 = scmp.lt.u32.totalorder %s2938_s12, %s2933_s18 }
  0xb0   : > { %p2942_p0 = scmp.lt.u32.totalorder %s2933_s18, %s3351_s11 }
  0xb1   : > { %p2937_p3 = pneg %p2936_p1  ;;  %p2941_p13 = por %p2940_p12, %p2939_p11 }
  0xb3   : > { %p2943_p2 = por %p2942_p0, %p2941_p13 }
  0xb5   : > { %p2944_p5 = pnand %p2943_p2, %p2937_p3 }
  0xb7   : > { %2947 = shalt.err (!%p2944_p5)
}
  0xb8   : > { %s2948_s16 = scalar_lea.vmem %s3353_s19, 64  ;;  %s3055_s29 = smov [#allocation2]  }
  0xb9   : > { %p2949_p10 = scmp.ne.s32.totalorder %s3353_s19, %s2948_s16  ;;  %s2953_s15 = sshll.u32 %s3055_s29, 4  ;;  %s2954_s15 = int_to_ptr.vmem [resolvable:$false] %s2953_s15 }
  0xba   : > { %s2955_s9 = scalar_lea.vmem %s2954_s15, 128  ;;  %p2956_p7 = scmp.lt.s32.totalorder %s3353_s19, %s2954_s15 }
  0xbb   : > { %p2951_p1 = pnand %p2949_p10, %p2935_p8  ;;  %p2957_p11 = scmp.lt.s32.totalorder %s2955_s9, %s2948_s16 }
  0xbd   : > { %p2952_p9 = pneg %p2951_p1  ;;  %p2958_p12 = por %p2957_p11, %p2956_p7 }
  0xbf   : > { %p2959_p13 = pnand %p2958_p12, %p2952_p9 }
  0xc1   : > { %2962 = shalt.err (!%p2959_p13)
}
  0xc2   : > { %2457 = dma.hbm_to_vmem [thread:$0]  (!%p3357_p4), %s3351_s11, 64, %s3353_s19, %s426_s1  }
  0xc3   : > { %p3552_p3 = scmp.ne.s32.totalorder %s3540_s28, 0 }
  0xc4   : > { %s3389_s18 = sand.u32 (!%p3552_p3), 1, %s3033_s22  }
  0xc5   : > { %445 = sbr.rel (%p3552_p3) target bundleno = 1614 (0x64e), region = 68  ;;  %s2154_s12 = sshll.u32 (!%p3552_p3), %s3389_s18, 2 }
  0xc6   : > { %s448_s14 = scalar_lea.sflag (!%p3552_p3), [#allocation3], %s3389_s18  ;;  %s451_s17 = scalar_lea.vmem (!%p3552_p3), [#allocation2], %s2154_s12 }
  0xcc   : > { %3008 = dma.done.wait (%p3332_p6), %s448_s14, 64  }
  0xcd   : > { %3010 = vsyncadd (%p3332_p6), %s448_s14, 4294967232  ;;  %p3553_p7 = scmp.eq.s32.totalorder %s3146_s27, 0 }
  0xcf   : > { %3012 = dma.done.wait (%p3553_p7), [#allocation6], 2304   ;;  %p3554_p9 = pmov %p3553_p7 }
  0xd0   : > { %p3555_p4 = pmov %p3553_p7 }
  0xd1   : > { %3014 = vsyncadd (%p3554_p9), [#allocation6], 4294964992 }
  0xd2   : > { %3016 = dma.done.wait (%p3555_p4), [#allocation9], 16384   ;;  %p3556_p8 = pmov %p3555_p4 }
  0xd3   : > { %p3557_p0 = pmov %p3555_p4 }
  0xd4   : > { %3018 = vsyncadd (%p3556_p8), [#allocation9], 4294950912 }
  0xd5   : > { %3020 = dma.done.wait (%p3557_p0), [#allocation12], 3072   ;;  %p3558_p2 = pmov %p3557_p0 }
  0xd6   : > { %v3056_v0 = vmov 0.0   ;;  %vm3057_vm0 = vmmov 0   ;;  %v2523_v1 = vld [vmem:[#allocation5] sm:$0xff]   ;;  %v2524_v2 = vld [vmem:[#allocation5 + $0x8] sm:$0xff]   ;;  %v2527_v3 = vld [vmem:[#allocation7 + $0x4] ss:$8 sps:$4 sm:$0xff]  }
  0xd7   : > { %3022 = vsyncadd (%p3558_p2), [#allocation12], 4294964224  ;;  %2373 = vmatprep.subr.bf16.mxu1 %v3056_v0  ;;  %2377 = vmatprep.mubr.msk.bf16.mxu1 %vm3057_vm0, %v3056_v0  ;;  %v517_v4 = vld [vmem:[%s451_s17] sm:$0xf]  ;;  %vm541_vm1 = vcmask 261120   ;;  %v3058_v20 = vmov 0  }
  0xd8   : > { %2374 = vmatpush3.bf16.msra.mxu1 %v2523_v1  ;;  %v2525_v5 = vld [vmem:[#allocation7] ss:$8 sps:$4 sm:$0xff]   ;;  %v2530_v6 = vld [vmem:[#allocation7 + $0x14] ss:$8 sps:$4 sm:$0xff]   ;;  %v2528_v7 = vld [vmem:[#allocation7 + $0x10] ss:$8 sps:$4 sm:$0xff]  }
  0xd9   : > { %2375 = vmatprep.subr.bf16.mxu1 %v3056_v0  ;;  %v2533_v8 = vld [vmem:[#allocation7 + $0x24] ss:$8 sps:$4 sm:$0xff]   ;;  %v2531_v9 = vld [vmem:[#allocation7 + $0x20] ss:$8 sps:$4 sm:$0xff]   ;;  %v2536_v10 = vld [vmem:[#allocation7 + $0x34] ss:$8 sps:$4 sm:$0xff]  }
  0xda   : > { %v2534_v11 = vld [vmem:[#allocation7 + $0x30] ss:$8 sps:$4 sm:$0xff]   ;;  %v2539_v12 = vld [vmem:[#allocation7 + $0x44] ss:$8 sps:$4 sm:$0xff]   ;;  %v2537_v13 = vld [vmem:[#allocation7 + $0x40] ss:$8 sps:$4 sm:$0xff]  }
  0xdb   : > { %v2542_v14 = vld [vmem:[#allocation7 + $0x54] ss:$8 sps:$4 sm:$0xff]   ;;  %v2540_v15 = vld [vmem:[#allocation7 + $0x50] ss:$8 sps:$4 sm:$0xff]   ;;  %v2545_v16 = vld [vmem:[#allocation7 + $0x64] ss:$8 sps:$4 sm:$0xff]  }
  0xdc   : > { %2376 = vmatpush3.bf16.msra.mxu1 %v2524_v2  ;;  %v2543_v17 = vld [vmem:[#allocation7 + $0x60] ss:$8 sps:$4 sm:$0xff]   ;;  %v2548_v18 = vld [vmem:[#allocation7 + $0x74] ss:$8 sps:$4 sm:$0xff]   ;;  %v2546_v19 = vld [vmem:[#allocation7 + $0x70] ss:$8 sps:$4 sm:$0xff]  }
  0xdd   : > { %695 = vmatprep.subr.bf16.mxu1 %v2527_v3  ;;  %v2549_v21 = vld [vmem:[#allocation8 + $0x4] ss:$16 sps:$4 sm:$0xff]   ;;  %v2553_v22 = vld [vmem:[#allocation8 + $0xc] ss:$16 sps:$4 sm:$0xff]   ;;  %v2554_v23 = vld [vmem:[#allocation8] ss:$16 sps:$4 sm:$0xff]  }
  0xde   : > { %v2555_v24 = vld [vmem:[#allocation8 + $0x24] ss:$16 sps:$4 sm:$0xff]   ;;  %1146 = vmatprep.subr.bf16.mxu0 %v2549_v21  ;;  %v2560_v25 = vld [vmem:[#allocation8 + $0x20] ss:$16 sps:$4 sm:$0xff]   ;;  %v2162_v50 = vld [vmem:[%s3522_s7] ss:$0 sm:$0xff] }
  0xdf   : > { %2378 = vmatmul.mubr.msk.bf16.vlgmr.msra.gmra.mrb[0].mxu1 %vm541_vm1, %v517_v4  ;;  %1147 = vmatpush1.bf16.msra.mxu0 %v2554_v23  ;;  %v2561_v26 = vld [vmem:[#allocation8 + $0x44] ss:$16 sps:$4 sm:$0xff]   ;;  %v2566_v27 = vld [vmem:[#allocation8 + $0x40] ss:$16 sps:$4 sm:$0xff]   ;;  %v2551_v57 = vld [vmem:[#allocation8 + $0x8] ss:$16 sps:$4 sm:$0xff]  }
  0xe0   : > { %696 = vmatpush1.bf16.msra.mxu1 %v2525_v5  ;;  %727 = vmatprep.mubr.bf16.mxu1 %v3058_v20  ;;  %v2567_v28 = vld [vmem:[#allocation8 + $0x64] ss:$16 sps:$4 sm:$0xff]   ;;  %v2572_v29 = vld [vmem:[#allocation8 + $0x60] ss:$16 sps:$4 sm:$0xff]   ;;  %v2559_v59 = vld [vmem:[#allocation8 + $0x2c] ss:$16 sps:$4 sm:$0xff]  }
  0xe1   : > { %697 = vmatprep.subr.bf16.mxu1 %v2530_v6  ;;  %1148 = vmatprep.subr.bf16.mxu0 %v2555_v24  ;;  %v2573_v30 = vld [vmem:[#allocation8 + $0x84] ss:$16 sps:$4 sm:$0xff]   ;;  %v2578_v31 = vld [vmem:[#allocation8 + $0x80] ss:$16 sps:$4 sm:$0xff]   ;;  %v2557_v60 = vld [vmem:[#allocation8 + $0x28] ss:$16 sps:$4 sm:$0xff]  }
  0xe2   : > { %v2579_v32 = vld [vmem:[#allocation8 + $0xa4] ss:$16 sps:$4 sm:$0xff]   ;;  %v2584_v33 = vld [vmem:[#allocation8 + $0xa0] ss:$16 sps:$4 sm:$0xff]   ;;  %v2565_v61 = vld [vmem:[#allocation8 + $0x4c] ss:$16 sps:$4 sm:$0xff]  }
  0xe3   : > { %1149 = vmatpush1.bf16.msra.mxu0 %v2560_v25  ;;  %v2585_v34 = vld [vmem:[#allocation8 + $0xc4] ss:$16 sps:$4 sm:$0xff]   ;;  %v2590_v35 = vld [vmem:[#allocation8 + $0xc0] ss:$16 sps:$4 sm:$0xff]   ;;  %v2563_v62 = vld [vmem:[#allocation8 + $0x48] ss:$16 sps:$4 sm:$0xff]  }
  0xe4   : > { %698 = vmatpush1.bf16.msra.mxu1 %v2528_v7  ;;  %1150 = vmatprep.subr.bf16.mxu0 %v2561_v26  ;;  %v2591_v36 = vld [vmem:[#allocation8 + $0xe4] ss:$16 sps:$4 sm:$0xff]   ;;  %v2596_v37 = vld [vmem:[#allocation8 + $0xe0] ss:$16 sps:$4 sm:$0xff]   ;;  %v2571_v63 = vld [vmem:[#allocation8 + $0x6c] ss:$16 sps:$4 sm:$0xff]  }
  0xe5   : > { %699 = vmatprep.subr.bf16.mxu1 %v2533_v8  ;;  %v2597_v38 = vld [vmem:[#allocation8 + $0x104] ss:$16 sps:$4 sm:$0xff]   ;;  %v2602_v39 = vld [vmem:[#allocation8 + $0x100] ss:$16 sps:$4 sm:$0xff]   ;;  %v2569_v1 = vld [vmem:[#allocation8 + $0x68] ss:$16 sps:$4 sm:$0xff]  }
  0xe6   : > { %v2603_v40 = vld [vmem:[#allocation8 + $0x124] ss:$16 sps:$4 sm:$0xff]   ;;  %v2608_v41 = vld [vmem:[#allocation8 + $0x120] ss:$16 sps:$4 sm:$0xff]   ;;  %v2577_v2 = vld [vmem:[#allocation8 + $0x8c] ss:$16 sps:$4 sm:$0xff]  }
  0xe7   : > { %1151 = vmatpush1.bf16.msra.mxu0 %v2566_v27  ;;  %v2609_v42 = vld [vmem:[#allocation8 + $0x144] ss:$16 sps:$4 sm:$0xff]   ;;  %v2614_v43 = vld [vmem:[#allocation8 + $0x140] ss:$16 sps:$4 sm:$0xff]   ;;  %v2575_v3 = vld [vmem:[#allocation8 + $0x88] ss:$16 sps:$4 sm:$0xff]  }
  0xe8   : > { %700 = vmatpush1.bf16.msra.mxu1 %v2531_v9  ;;  %1152 = vmatprep.subr.bf16.mxu0 %v2567_v28  ;;  %v2615_v44 = vld [vmem:[#allocation8 + $0x164] ss:$16 sps:$4 sm:$0xff]   ;;  %v2620_v45 = vld [vmem:[#allocation8 + $0x160] ss:$16 sps:$4 sm:$0xff]   ;;  %v2583_v4 = vld [vmem:[#allocation8 + $0xac] ss:$16 sps:$4 sm:$0xff]  }
  0xe9   : > { %701 = vmatprep.subr.bf16.mxu1 %v2536_v10  ;;  %v2621_v46 = vld [vmem:[#allocation8 + $0x184] ss:$16 sps:$4 sm:$0xff]   ;;  %v2626_v47 = vld [vmem:[#allocation8 + $0x180] ss:$16 sps:$4 sm:$0xff]   ;;  %v2581_v5 = vld [vmem:[#allocation8 + $0xa8] ss:$16 sps:$4 sm:$0xff]  }
  0xea   : > { %v2627_v48 = vld [vmem:[#allocation8 + $0x1a4] ss:$16 sps:$4 sm:$0xff]   ;;  %v2632_v49 = vld [vmem:[#allocation8 + $0x1a0] ss:$16 sps:$4 sm:$0xff]   ;;  %v2589_v6 = vld [vmem:[#allocation8 + $0xcc] ss:$16 sps:$4 sm:$0xff]  }
  0xeb   : > { %1153 = vmatpush1.bf16.msra.mxu0 %v2572_v29  ;;  %v2587_v7 = vld [vmem:[#allocation8 + $0xc8] ss:$16 sps:$4 sm:$0xff]   ;;  %v2595_v8 = vld [vmem:[#allocation8 + $0xec] ss:$16 sps:$4 sm:$0xff]   ;;  %v2638_v25 = vld [vmem:[#allocation8 + $0x1c0] ss:$16 sps:$4 sm:$0xff]  }
  0xec   : > { %702 = vmatpush1.bf16.msra.mxu1 %v2534_v11  ;;  %1154 = vmatprep.subr.bf16.mxu0 %v2573_v30  ;;  %v2593_v9 = vld [vmem:[#allocation8 + $0xe8] ss:$16 sps:$4 sm:$0xff]   ;;  %v2601_v10 = vld [vmem:[#allocation8 + $0x10c] ss:$16 sps:$4 sm:$0xff]   ;;  %v2639_v26 = vld [vmem:[#allocation8 + $0x1e4] ss:$16 sps:$4 sm:$0xff]  }
  0xed   : > { %703 = vmatprep.subr.bf16.mxu1 %v2539_v12  ;;  %v2599_v11 = vld [vmem:[#allocation8 + $0x108] ss:$16 sps:$4 sm:$0xff]   ;;  %v2607_v12 = vld [vmem:[#allocation8 + $0x12c] ss:$16 sps:$4 sm:$0xff]   ;;  %v2644_v29 = vld [vmem:[#allocation8 + $0x1e0] ss:$16 sps:$4 sm:$0xff]  }
  0xee   : > { %v2631_v20 = vld [vmem:[#allocation8 + $0x1ac] ss:$16 sps:$4 sm:$0xff]   ;;  %v2629_v21 = vld [vmem:[#allocation8 + $0x1a8] ss:$16 sps:$4 sm:$0xff]   ;;  %s3559_s16 = sld [smem:[#allocation21_spill]]  ;;  %s3560_s9 = sld [smem:[#allocation22_spill]] }
  0xef   : > { %1155 = vmatpush1.bf16.msra.mxu0 %v2578_v31  ;;  %v2637_v23 = vld [vmem:[#allocation8 + $0x1cc] ss:$16 sps:$4 sm:$0xff]   ;;  %v2635_v24 = vld [vmem:[#allocation8 + $0x1c8] ss:$16 sps:$4 sm:$0xff]   ;;  %v605_v31 = vlaneseq  ;;  %s3561_s28 = sld [smem:[#allocation23_spill]]  ;;  %s2336_s30 = sshll.u32 %s3146_s27, 6 }
  0xf0   : > { %704 = vmatpush1.bf16.msra.mxu1 %v2537_v13  ;;  %1156 = vmatprep.subr.bf16.mxu0 %v2579_v32  ;;  %v2605_v13 = vld [vmem:[#allocation8 + $0x128] ss:$16 sps:$4 sm:$0xff]   ;;  %v2643_v27 = vld [vmem:[#allocation8 + $0x1ec] ss:$16 sps:$4 sm:$0xff]   ;;  %s515_s11 = scalar_lea.vmem [#allocation14], %s2154_s12  ;;  %s2002_s27 = scalar_lea.sflag [#allocation4], %s3389_s18 }
  0xf1   : > { %705 = vmatprep.subr.bf16.mxu1 %v2542_v14  ;;  %v2613_v14 = vld [vmem:[#allocation8 + $0x14c] ss:$16 sps:$4 sm:$0xff]   ;;  %v2641_v28 = vld [vmem:[#allocation8 + $0x1e8] ss:$16 sps:$4 sm:$0xff]   ;;  %v3418_v32 = vshrl.u32 %v605_v31, 7  ;;  %s2015_s19 = sshll.u32 %s515_s11, 4  ;;  %s3473_s19 = int_to_ptr.vmem [resolvable:$true] %s2015_s19 }
  0xf2   : > { %v2647_v30 = vld [vmem:[#allocation10 + $0x4] ss:$8 sps:$4 sm:$0xff]   ;;  %s2963_s15 = scalar_lea.vmem %s3473_s19, 64  ;;  %p3563_p5 = scmp.ne.s32.totalorder %s3549_s26, 0 }
  0xf3   : > { %1157 = vmatpush1.bf16.msra.mxu0 %v2584_v33  ;;  %v3421_v33 = vsub.s32 0, %v3418_v32  ;;  %p2964_p6 = scmp.ne.s32.totalorder %s3473_s19, %s2963_s15  ;;  %s3059_s12 = smov [#allocation14]  }
  0xf4   : > { %706 = vmatpush1.bf16.msra.mxu1 %v2540_v15  ;;  %1158 = vmatprep.subr.bf16.mxu0 %v2585_v34  ;;  %v2611_v15 = vld [vmem:[#allocation8 + $0x148] ss:$16 sps:$4 sm:$0xff]  }
  0xf5   : > { %707 = vmatprep.subr.bf16.mxu1 %v2545_v16  ;;  %v2619_v16 = vld [vmem:[#allocation8 + $0x16c] ss:$16 sps:$4 sm:$0xff]   ;;  %v603_v34 = vld [vmem:[%s3523_s8] sm:$0x3]  ;;  %p2965_p10 = pnand %p2964_p6, %p3563_p5 }
  0xf7   : > { %1159 = vmatpush1.bf16.msra.mxu0 %v2590_v35  ;;  %v3427_v35 = vsub.s32 1, %v3418_v32  ;;  %p2966_p1 = pneg %p2965_p10 }
  0xf8   : > { %708 = vmatpush1.bf16.msra.mxu1 %v2543_v17  ;;  %1160 = vmatprep.subr.bf16.mxu0 %v2591_v36  ;;  %v2617_v17 = vld [vmem:[#allocation8 + $0x168] ss:$16 sps:$4 sm:$0xff]   ;;  %v608_v36 = vrot.slane %v603_v34, %v3421_v33 }
  0xf9   : > { %709 = vmatprep.subr.bf16.mxu1 %v2548_v18  ;;  %v2625_v18 = vld [vmem:[#allocation8 + $0x18c] ss:$16 sps:$4 sm:$0xff]  }
  0xfb   : > { %1161 = vmatpush1.bf16.msra.mxu0 %v2596_v37  ;;  %v612_v37 = vrot.slane %v603_v34, %v3427_v35 }
  0xfc   : > { %710 = vmatpush1.bf16.msra.mxu1 %v2546_v19  ;;  %1162 = vmatprep.subr.bf16.mxu0 %v2597_v38  ;;  %v2623_v19 = vld [vmem:[#allocation8 + $0x188] ss:$16 sps:$4 sm:$0xff]  }
  0xfd   : > { %1187 = vmatprep.subr.bf16.mxu1 %v2553_v22  ;;  %v2633_v22 = vld [vmem:[#allocation8 + $0x1c4] ss:$16 sps:$4 sm:$0xff]  }
  0xff   : > { %1163 = vmatpush1.bf16.msra.mxu0 %v2602_v39 }
 0x100   : > { %1164 = vmatprep.subr.bf16.mxu0 %v2603_v40 }
 0x103   : > { %1165 = vmatpush1.bf16.msra.mxu0 %v2608_v41 }
 0x104   : > { %1166 = vmatprep.subr.bf16.mxu0 %v2609_v42 }
 0x107   : > { %1167 = vmatpush1.bf16.msra.mxu0 %v2614_v43 }
 0x108   : > { %1168 = vmatprep.subr.bf16.mxu0 %v2615_v44 }
 0x10b   : > { %1169 = vmatpush1.bf16.msra.mxu0 %v2620_v45 }
 0x10c   : > { %1170 = vmatprep.subr.bf16.mxu0 %v2621_v46 }
 0x10f   : > { %1171 = vmatpush1.bf16.msra.mxu0 %v2626_v47  ;;  %v2645_v47 = vld [vmem:[#allocation10] ss:$8 sps:$4 sm:$0xff]  }
 0x110   : > { %1172 = vmatprep.subr.bf16.mxu0 %v2627_v48 }
 0x113   : > { %1173 = vmatpush1.bf16.msra.mxu0 %v2632_v49  ;;  %v2650_v49 = vld [vmem:[#allocation10 + $0x14] ss:$8 sps:$4 sm:$0xff]  }
 0x114   : > { %1174 = vmatprep.subr.bf16.mxu0 %v2633_v22  ;;  %v2746_v22 = vld [vmem:[#allocation11 + $0x10] sm:$0xff]  }
 0x117   : > { %1175 = vmatpush1.bf16.msra.mxu0 %v2638_v25  ;;  %v2749_v25 = vld [vmem:[#allocation11 + $0x60] sm:$0xff]  }
 0x118   : > { %1176 = vmatprep.subr.bf16.mxu0 %v2639_v26  ;;  %v2750_v26 = vld [vmem:[#allocation11 + $0x20] sm:$0xff]  }
 0x11b   : > { %1177 = vmatpush1.bf16.msra.mxu0 %v2644_v29  ;;  %v3434_v29 = vld [vmem:[%s3559_s16] sm:$0xf]  ;;  %s3562_s16 = sld [smem:[#allocation24_spill]] }
 0x11c   : > { %1632 = vmatprep.subr.bf16.mxu0 %v2647_v30  ;;  %v820_v30 = vsub.s32 3, %v3418_v32  ;;  %v809_v31 = vrot.slane %v3434_v29, %v3421_v33  ;;  %v813_v34 = vrot.slane %v3434_v29, %v3427_v35 }
 0x121   : > { %s3471_s29 = scalar_lea.hbm %s3562_s16, %s2336_s30 }
 0x1b2   : > { %v579_v51 = vpop.f32.mrb[0].mxu1 }
 0x1b3   : > { %v580_v52 = vadd.f32 %v2162_v50, %v579_v51  ;;  %v2379_v53 = vpop.f32.mrb[1].mxu1  ;;  %v2648_v50 = vld [vmem:[#allocation10 + $0x10] ss:$8 sps:$4 sm:$0xff]   ;;  %v2653_v51 = vld [vmem:[#allocation10 + $0x24] ss:$8 sps:$4 sm:$0xff]  }
 0x1b4   : > { %v582_v54 = vpop.f32.mrb[2].mxu1  ;;  %v2656_v53 = vld [vmem:[#allocation10 + $0x34] ss:$8 sps:$4 sm:$0xff]  }
 0x1b5   : > { %v585_v55 = vmax.f32 %v580_v52, 0.0  ;;  %v2380_v56 = vpop.f32.mrb[3].mxu1  ;;  %v2651_v52 = vld [vmem:[#allocation10 + $0x20] ss:$8 sps:$4 sm:$0xff]   ;;  %v2654_v54 = vld [vmem:[#allocation10 + $0x30] ss:$8 sps:$4 sm:$0xff]  }
 0x1b6   : > { %v2657_v56 = vld [vmem:[#allocation10 + $0x40] ss:$8 sps:$4 sm:$0xff]  }
 0x1b7   : > { %v586_v58 = vpack.c.bf16 %v585_v55, %v585_v55  ;;  %v2659_v55 = vld [vmem:[#allocation10 + $0x44] ss:$8 sps:$4 sm:$0xff]  }
 0x1b9   : > { %728 = vmatmul.mubr.bf16.vlgmr.msra.gmra.mrb[4].mxu1 %v586_v58  ;;  %v2660_v58 = vld [vmem:[#allocation10 + $0x50] ss:$8 sps:$4 sm:$0xff]  }
 0x1ba   : > { %1188 = vmatpush1.bf16.msra.mxu1 %v2551_v57  ;;  %v2662_v57 = vld [vmem:[#allocation10 + $0x54] ss:$8 sps:$4 sm:$0xff]  }
 0x1bb   : > { %1189 = vmatprep.subr.bf16.mxu1 %v2559_v59  ;;  %v2665_v59 = vld [vmem:[#allocation10 + $0x64] ss:$8 sps:$4 sm:$0xff]  }
 0x1be   : > { %1190 = vmatpush1.bf16.msra.mxu1 %v2557_v60  ;;  %v2663_v60 = vld [vmem:[#allocation10 + $0x60] ss:$8 sps:$4 sm:$0xff]  }
 0x1bf   : > { %1191 = vmatprep.subr.bf16.mxu1 %v2565_v61  ;;  %v2668_v61 = vld [vmem:[#allocation10 + $0x74] ss:$8 sps:$4 sm:$0xff]  }
 0x1c2   : > { %1192 = vmatpush1.bf16.msra.mxu1 %v2563_v62  ;;  %v2666_v62 = vld [vmem:[#allocation10 + $0x70] ss:$8 sps:$4 sm:$0xff]  }
 0x1c3   : > { %1193 = vmatprep.subr.bf16.mxu1 %v2571_v63  ;;  %v2671_v63 = vld [vmem:[#allocation10 + $0x84] ss:$8 sps:$4 sm:$0xff]  }
 0x1c6   : > { %1194 = vmatpush1.bf16.msra.mxu1 %v2569_v1  ;;  %v2669_v1 = vld [vmem:[#allocation10 + $0x80] ss:$8 sps:$4 sm:$0xff]  }
 0x1c7   : > { %1195 = vmatprep.subr.bf16.mxu1 %v2577_v2  ;;  %v2674_v2 = vld [vmem:[#allocation10 + $0x94] ss:$8 sps:$4 sm:$0xff]  }
 0x1ca   : > { %1196 = vmatpush1.bf16.msra.mxu1 %v2575_v3  ;;  %v2672_v3 = vld [vmem:[#allocation10 + $0x90] ss:$8 sps:$4 sm:$0xff]  }
 0x1cb   : > { %1197 = vmatprep.subr.bf16.mxu1 %v2583_v4  ;;  %v2677_v4 = vld [vmem:[#allocation10 + $0xa4] ss:$8 sps:$4 sm:$0xff]  }
 0x1ce   : > { %1198 = vmatpush1.bf16.msra.mxu1 %v2581_v5  ;;  %v2675_v5 = vld [vmem:[#allocation10 + $0xa0] ss:$8 sps:$4 sm:$0xff]  }
 0x1cf   : > { %1199 = vmatprep.subr.bf16.mxu1 %v2589_v6  ;;  %v2680_v6 = vld [vmem:[#allocation10 + $0xb4] ss:$8 sps:$4 sm:$0xff]  }
 0x1d2   : > { %1200 = vmatpush1.bf16.msra.mxu1 %v2587_v7  ;;  %v2678_v7 = vld [vmem:[#allocation10 + $0xb0] ss:$8 sps:$4 sm:$0xff]  }
 0x1d3   : > { %1201 = vmatprep.subr.bf16.mxu1 %v2595_v8  ;;  %v2683_v8 = vld [vmem:[#allocation10 + $0xc4] ss:$8 sps:$4 sm:$0xff]  }
 0x1d6   : > { %1202 = vmatpush1.bf16.msra.mxu1 %v2593_v9  ;;  %v2681_v9 = vld [vmem:[#allocation10 + $0xc0] ss:$8 sps:$4 sm:$0xff]  }
 0x1d7   : > { %1203 = vmatprep.subr.bf16.mxu1 %v2601_v10  ;;  %v2686_v10 = vld [vmem:[#allocation10 + $0xd4] ss:$8 sps:$4 sm:$0xff]  }
 0x1da   : > { %1204 = vmatpush1.bf16.msra.mxu1 %v2599_v11  ;;  %v2684_v11 = vld [vmem:[#allocation10 + $0xd0] ss:$8 sps:$4 sm:$0xff]  }
 0x1db   : > { %1205 = vmatprep.subr.bf16.mxu1 %v2607_v12  ;;  %v2689_v12 = vld [vmem:[#allocation10 + $0xe4] ss:$8 sps:$4 sm:$0xff]  }
 0x1de   : > { %1206 = vmatpush1.bf16.msra.mxu1 %v2605_v13  ;;  %v2687_v13 = vld [vmem:[#allocation10 + $0xe0] ss:$8 sps:$4 sm:$0xff]  }
 0x1df   : > { %1207 = vmatprep.subr.bf16.mxu1 %v2613_v14  ;;  %v2692_v14 = vld [vmem:[#allocation10 + $0xf4] ss:$8 sps:$4 sm:$0xff]  }
 0x1e2   : > { %1208 = vmatpush1.bf16.msra.mxu1 %v2611_v15  ;;  %v2690_v15 = vld [vmem:[#allocation10 + $0xf0] ss:$8 sps:$4 sm:$0xff]  }
 0x1e3   : > { %1209 = vmatprep.subr.bf16.mxu1 %v2619_v16  ;;  %v2695_v16 = vld [vmem:[#allocation10 + $0x104] ss:$8 sps:$4 sm:$0xff]  }
 0x1e6   : > { %1210 = vmatpush1.bf16.msra.mxu1 %v2617_v17  ;;  %v2741_v17 = vld [vmem:[#allocation11 + $0x40] sm:$0xff]  }
 0x1e7   : > { %1211 = vmatprep.subr.bf16.mxu1 %v2625_v18  ;;  %v2742_v18 = vld [vmem:[#allocation11] sm:$0xff]  }
 0x1ea   : > { %1212 = vmatpush1.bf16.msra.mxu1 %v2623_v19  ;;  %v2743_v19 = vld [vmem:[#allocation11 + $0x48] sm:$0xff]  }
 0x1eb   : > { %1213 = vmatprep.subr.bf16.mxu1 %v2631_v20  ;;  %v2744_v20 = vld [vmem:[#allocation11 + $0x8] sm:$0xff]  }
 0x1ee   : > { %1214 = vmatpush1.bf16.msra.mxu1 %v2629_v21  ;;  %v2745_v21 = vld [vmem:[#allocation11 + $0x50] sm:$0xff]  }
 0x1ef   : > { %1215 = vmatprep.subr.bf16.mxu1 %v2637_v23  ;;  %v2747_v23 = vld [vmem:[#allocation11 + $0x58] sm:$0xff]  }
 0x1f2   : > { %1216 = vmatpush1.bf16.msra.mxu1 %v2635_v24  ;;  %v2748_v24 = vld [vmem:[#allocation11 + $0x18] sm:$0xff]  }
 0x1f3   : > { %1217 = vmatprep.subr.bf16.mxu1 %v2643_v27  ;;  %v2751_v27 = vld [vmem:[#allocation11 + $0x68] sm:$0xff]  }
 0x1f6   : > { %1218 = vmatpush1.bf16.msra.mxu1 %v2641_v28  ;;  %v2752_v28 = vld [vmem:[#allocation11 + $0x28] sm:$0xff]  }
 0x1f7   : > { %2342 = vmatprep.subr.bf16.mxu1 %v2741_v17  ;;  %v2734_v17 = vld [vmem:[#allocation10 + $0x1d4] ss:$8 sps:$4 sm:$0xff]  }
 0x28c   : > { %v729_v38 = vpop.f32.mrb[4].mxu1 }
 0x28d   : > { %v730_v39 = vadd.f32 %v729_v38, %v608_v36  ;;  %v731_v40 = vpop.f32.mrb[5].mxu1  ;;  %v821_v36 = vrot.slane %v3434_v29, %v820_v30  ;;  %v1300_v30 = vld [vmem:[%s3560_s9] sm:$0x3]  ;;  %s2967_s9 = sshll.u32 %s3059_s12, 4  ;;  %s2968_s9 = int_to_ptr.vmem [resolvable:$false] %s2967_s9 }
 0x28e   : > { %v732_v41 = vadd.f32 %v731_v40, %v612_v37  ;;  %v733_v42 = vpop.f32.mrb[6].mxu1  ;;  %s2969_s14 = scalar_lea.vmem %s2968_s9, 128  ;;  %p2970_p11 = scmp.lt.s32.totalorder %s3473_s19, %s2968_s9 }
 0x28f   : > { %v736_v43 = vmax.f32 %v730_v39, 0.0  ;;  %v734_v44 = vpop.f32.mrb[7].mxu1  ;;  %p2971_p12 = scmp.lt.s32.totalorder %s2969_s14, %s2963_s15 }
 0x290   : > { %v737_v45 = vmax.f32 %v732_v41, 0.0 }
 0x291   : > { %v738_v48 = vpack.c.bf16 %v736_v43, %v736_v43  ;;  %p2972_p13 = por %p2971_p12, %p2970_p11 }
 0x292   : > { %v739_v46 = vpack.c.bf16 %v737_v45, %v737_v45 }
 0x293   : > { %p2973_p3 = pnand %p2972_p13, %p2966_p1 }
 0x294   : > { %1178 = vmatprep.mubr.bf16.mxu0 %v739_v46  ;;  %1219 = vmatprep.mubr.bf16.mxu1 %v739_v46 }
 0x295   : > { %1179 = vmatmul.mubr.bf16.vlgmr.msra.gmra.mrb[0].mxu0 %v738_v48  ;;  %1220 = vmatmul.mubr.bf16.vlgmr.msra.gmra.mrb[8].mxu1 %v738_v48 }
 0x296   : > { %1633 = vmatpush1.bf16.msra.mxu0 %v2645_v47  ;;  %2343 = vmatpush3.bf16.msra.mxu1 %v2742_v18  ;;  %v2732_v18 = vld [vmem:[#allocation10 + $0x1d0] ss:$8 sps:$4 sm:$0xff]  }
 0x297   : > { %1634 = vmatprep.subr.bf16.mxu0 %v2650_v49  ;;  %2344 = vmatprep.subr.bf16.mxu1 %v2743_v19 }
 0x29a   : > { %1635 = vmatpush1.bf16.msra.mxu0 %v2648_v50  ;;  %2345 = vmatpush3.bf16.msra.mxu1 %v2744_v20  ;;  %v2737_v20 = vld [vmem:[#allocation10 + $0x1e4] ss:$8 sps:$4 sm:$0xff]  }
 0x29b   : > { %1636 = vmatprep.subr.bf16.mxu0 %v2653_v51  ;;  %2346 = vmatprep.subr.bf16.mxu1 %v2745_v21  ;;  %v2735_v21 = vld [vmem:[#allocation10 + $0x1e0] ss:$8 sps:$4 sm:$0xff]  }
 0x29e   : > { %1637 = vmatpush1.bf16.msra.mxu0 %v2651_v52  ;;  %2347 = vmatpush3.bf16.msra.mxu1 %v2746_v22  ;;  %v2693_v52 = vld [vmem:[#allocation10 + $0x100] ss:$8 sps:$4 sm:$0xff]  }
 0x29f   : > { %1638 = vmatprep.subr.bf16.mxu0 %v2656_v53  ;;  %2348 = vmatprep.subr.bf16.mxu1 %v2747_v23  ;;  %v2740_v23 = vld [vmem:[#allocation10 + $0x1f4] ss:$8 sps:$4 sm:$0xff]  }
 0x2a2   : > { %1639 = vmatpush1.bf16.msra.mxu0 %v2654_v54  ;;  %2349 = vmatpush3.bf16.msra.mxu1 %v2748_v24  ;;  %v2698_v54 = vld [vmem:[#allocation10 + $0x114] ss:$8 sps:$4 sm:$0xff]   ;;  %v2738_v24 = vld [vmem:[#allocation10 + $0x1f0] ss:$8 sps:$4 sm:$0xff]  }
 0x2a3   : > { %1640 = vmatprep.subr.bf16.mxu0 %v2659_v55  ;;  %2350 = vmatprep.subr.bf16.mxu1 %v2749_v25 }
 0x2a6   : > { %1641 = vmatpush1.bf16.msra.mxu0 %v2657_v56  ;;  %2351 = vmatpush3.bf16.msra.mxu1 %v2750_v26  ;;  %v2696_v56 = vld [vmem:[#allocation10 + $0x110] ss:$8 sps:$4 sm:$0xff]  }
 0x2a7   : > { %1642 = vmatprep.subr.bf16.mxu0 %v2662_v57  ;;  %2352 = vmatprep.subr.bf16.mxu1 %v2751_v27  ;;  %v2701_v57 = vld [vmem:[#allocation10 + $0x124] ss:$8 sps:$4 sm:$0xff]   ;;  %v2753_v26 = vld [vmem:[#allocation11 + $0x70] sm:$0xff]  }
 0x2a8   : > { %v2754_v27 = vld [vmem:[#allocation11 + $0x30] sm:$0xff]  }
 0x2aa   : > { %1643 = vmatpush1.bf16.msra.mxu0 %v2660_v58  ;;  %2353 = vmatpush3.bf16.msra.mxu1 %v2752_v28  ;;  %v2699_v58 = vld [vmem:[#allocation10 + $0x120] ss:$8 sps:$4 sm:$0xff]   ;;  %v2755_v28 = vld [vmem:[#allocation11 + $0x78] sm:$0xff]  }
 0x2ab   : > { %1644 = vmatprep.subr.bf16.mxu0 %v2665_v59  ;;  %v2704_v59 = vld [vmem:[#allocation10 + $0x134] ss:$8 sps:$4 sm:$0xff]   ;;  %2354 = vmatprep.subr.bf16.mxu1 %v2753_v26 }
 0x2ae   : > { %1645 = vmatpush1.bf16.msra.mxu0 %v2663_v60  ;;  %v2702_v60 = vld [vmem:[#allocation10 + $0x130] ss:$8 sps:$4 sm:$0xff]   ;;  %2355 = vmatpush3.bf16.msra.mxu1 %v2754_v27 }
 0x2af   : > { %1646 = vmatprep.subr.bf16.mxu0 %v2668_v61  ;;  %v2707_v61 = vld [vmem:[#allocation10 + $0x144] ss:$8 sps:$4 sm:$0xff]   ;;  %2356 = vmatprep.subr.bf16.mxu1 %v2755_v28 }
 0x2b2   : > { %1647 = vmatpush1.bf16.msra.mxu0 %v2666_v62  ;;  %v2705_v62 = vld [vmem:[#allocation10 + $0x140] ss:$8 sps:$4 sm:$0xff]  }
 0x2b3   : > { %1648 = vmatprep.subr.bf16.mxu0 %v2671_v63  ;;  %v2710_v63 = vld [vmem:[#allocation10 + $0x154] ss:$8 sps:$4 sm:$0xff]  }
 0x2b6   : > { %1649 = vmatpush1.bf16.msra.mxu0 %v2669_v1  ;;  %v2708_v1 = vld [vmem:[#allocation10 + $0x150] ss:$8 sps:$4 sm:$0xff]  }
 0x2b7   : > { %1650 = vmatprep.subr.bf16.mxu0 %v2674_v2  ;;  %v2713_v2 = vld [vmem:[#allocation10 + $0x164] ss:$8 sps:$4 sm:$0xff]  }
 0x2ba   : > { %1651 = vmatpush1.bf16.msra.mxu0 %v2672_v3  ;;  %v2711_v3 = vld [vmem:[#allocation10 + $0x160] ss:$8 sps:$4 sm:$0xff]  }
 0x2bb   : > { %1652 = vmatprep.subr.bf16.mxu0 %v2677_v4  ;;  %v2716_v4 = vld [vmem:[#allocation10 + $0x174] ss:$8 sps:$4 sm:$0xff]  }
 0x2be   : > { %1653 = vmatpush1.bf16.msra.mxu0 %v2675_v5  ;;  %v2714_v5 = vld [vmem:[#allocation10 + $0x170] ss:$8 sps:$4 sm:$0xff]  }
 0x2bf   : > { %1654 = vmatprep.subr.bf16.mxu0 %v2680_v6  ;;  %v2719_v6 = vld [vmem:[#allocation10 + $0x184] ss:$8 sps:$4 sm:$0xff]  }
 0x2c2   : > { %1655 = vmatpush1.bf16.msra.mxu0 %v2678_v7  ;;  %v2717_v7 = vld [vmem:[#allocation10 + $0x180] ss:$8 sps:$4 sm:$0xff]  }
 0x2c3   : > { %1656 = vmatprep.subr.bf16.mxu0 %v2683_v8  ;;  %v2722_v8 = vld [vmem:[#allocation10 + $0x194] ss:$8 sps:$4 sm:$0xff]  }
 0x2c6   : > { %1657 = vmatpush1.bf16.msra.mxu0 %v2681_v9  ;;  %v2720_v9 = vld [vmem:[#allocation10 + $0x190] ss:$8 sps:$4 sm:$0xff]  }
 0x2c7   : > { %1658 = vmatprep.subr.bf16.mxu0 %v2686_v10  ;;  %v2725_v10 = vld [vmem:[#allocation10 + $0x1a4] ss:$8 sps:$4 sm:$0xff]  }
 0x2ca   : > { %1659 = vmatpush1.bf16.msra.mxu0 %v2684_v11  ;;  %v2723_v11 = vld [vmem:[#allocation10 + $0x1a0] ss:$8 sps:$4 sm:$0xff]  }
 0x2cb   : > { %1660 = vmatprep.subr.bf16.mxu0 %v2689_v12  ;;  %v2728_v12 = vld [vmem:[#allocation10 + $0x1b4] ss:$8 sps:$4 sm:$0xff]  }
 0x2ce   : > { %1661 = vmatpush1.bf16.msra.mxu0 %v2687_v13  ;;  %v2726_v13 = vld [vmem:[#allocation10 + $0x1b0] ss:$8 sps:$4 sm:$0xff]  }
 0x2cf   : > { %1662 = vmatprep.subr.bf16.mxu0 %v2692_v14  ;;  %v2731_v14 = vld [vmem:[#allocation10 + $0x1c4] ss:$8 sps:$4 sm:$0xff]  }
 0x2d2   : > { %1663 = vmatpush1.bf16.msra.mxu0 %v2690_v15  ;;  %v2729_v15 = vld [vmem:[#allocation10 + $0x1c0] ss:$8 sps:$4 sm:$0xff]  }
 0x2d3   : > { %1673 = vmatprep.subr.bf16.mxu0 %v2695_v16  ;;  %v816_v16 = vsub.s32 2, %v3418_v32 }
 0x2d5   : > { %v817_v19 = vrot.slane %v3434_v29, %v816_v16  ;;  %v2756_v29 = vld [vmem:[#allocation11 + $0x38] sm:$0xff]  }
 0x2d6   : > { %2357 = vmatpush3.bf16.msra.mxu1 %v2756_v29 }
 0x2d7   : > { %2381 = vmatprep.subr.bf16.mxu1 %v3056_v0 }
 0x368   : > { %v1180_v37 = vpop.f32.mrb[0].mxu0  ;;  %v3442_v38 = vpop.f32.mrb[8].mxu1 }
 0x369   : > { %v1181_v39 = vadd.f32 %v1180_v37, %v809_v31  ;;  %v1182_v40 = vpop.f32.mrb[1].mxu0  ;;  %v1223_v41 = vpop.f32.mrb[9].mxu1  ;;  %v1222_v22 = vadd.f32 %v3442_v38, %v817_v19  ;;  %v1305_v31 = vrot.slane %v1300_v30, %v3421_v33  ;;  %v2759_v33 = vld [vmem:[#allocation13 + $0x10] sm:$0xff]  }
 0x36a   : > { %v1183_v42 = vadd.f32 %v1182_v40, %v813_v34  ;;  %v1224_v43 = vadd.f32 %v1223_v41, %v821_v36  ;;  %v1184_v44 = vpop.f32.mrb[2].mxu0  ;;  %v1225_v45 = vpop.f32.mrb[10].mxu1  ;;  %v1309_v34 = vrot.slane %v1300_v30, %v3427_v35  ;;  %v2760_v35 = vld [vmem:[#allocation13 + $0x18] sm:$0xff]  }
 0x36b   : > { %v1228_v46 = vmax.f32 %v1181_v39, 0.0  ;;  %v1185_v47 = vpop.f32.mrb[3].mxu0  ;;  %v1226_v48 = vpop.f32.mrb[11].mxu1  ;;  %v1230_v25 = vmax.f32 %v1222_v22, 0.0  ;;  %v2757_v45 = vld [vmem:[#allocation13] sm:$0xff]  }
 0x36c   : > { %v1229_v49 = vmax.f32 %v1183_v42, 0.0  ;;  %v1231_v50 = vmax.f32 %v1224_v43, 0.0  ;;  %v2758_v47 = vld [vmem:[#allocation13 + $0x8] sm:$0xff]   ;;  %v2761_v48 = vld [vmem:[#allocation13 + $0x20] sm:$0xff]  }
 0x36d   : > { %v1232_v53 = vpack.c.bf16 %v1228_v46, %v1228_v46  ;;  %v1234_v32 = vpack.c.bf16 %v1230_v25, %v1230_v25 }
 0x36e   : > { %v1233_v51 = vpack.c.bf16 %v1229_v49, %v1229_v49  ;;  %v1235_v55 = vpack.c.bf16 %v1231_v50, %v1231_v50  ;;  %v2762_v49 = vld [vmem:[#allocation13 + $0x28] sm:$0xff]   ;;  %v2763_v50 = vld [vmem:[#allocation13 + $0x30] sm:$0xff]  }
 0x370   : > { %1664 = vmatprep.mubr.bf16.mxu0 %v1233_v51  ;;  %v2764_v51 = vld [vmem:[#allocation13 + $0x38] sm:$0xff]  }
 0x371   : > { %1665 = vmatmul.mubr.bf16.vlgmr.msra.gmra.mrb[4].mxu0 %v1232_v53  ;;  %v2310_v53 = vld [vmem:[%s3561_s28] ss:$0 sm:$0xff] }
 0x372   : > { %1674 = vmatpush1.bf16.msra.mxu0 %v2693_v52  ;;  %1705 = vmatprep.mubr.bf16.mxu0 %v1235_v55 }
 0x373   : > { %1675 = vmatprep.subr.bf16.mxu0 %v2698_v54 }
 0x376   : > { %1676 = vmatpush1.bf16.msra.mxu0 %v2696_v56 }
 0x377   : > { %1677 = vmatprep.subr.bf16.mxu0 %v2701_v57 }
 0x37a   : > { %1678 = vmatpush1.bf16.msra.mxu0 %v2699_v58 }
 0x37b   : > { %1679 = vmatprep.subr.bf16.mxu0 %v2704_v59 }
 0x37e   : > { %1680 = vmatpush1.bf16.msra.mxu0 %v2702_v60 }
 0x37f   : > { %1681 = vmatprep.subr.bf16.mxu0 %v2707_v61 }
 0x382   : > { %1682 = vmatpush1.bf16.msra.mxu0 %v2705_v62 }
 0x383   : > { %1683 = vmatprep.subr.bf16.mxu0 %v2710_v63 }
 0x386   : > { %1684 = vmatpush1.bf16.msra.mxu0 %v2708_v1 }
 0x387   : > { %1685 = vmatprep.subr.bf16.mxu0 %v2713_v2 }
 0x38a   : > { %1686 = vmatpush1.bf16.msra.mxu0 %v2711_v3 }
 0x38b   : > { %1687 = vmatprep.subr.bf16.mxu0 %v2716_v4 }
 0x38e   : > { %1688 = vmatpush1.bf16.msra.mxu0 %v2714_v5 }
 0x38f   : > { %1689 = vmatprep.subr.bf16.mxu0 %v2719_v6 }
 0x392   : > { %1690 = vmatpush1.bf16.msra.mxu0 %v2717_v7 }
 0x393   : > { %1691 = vmatprep.subr.bf16.mxu0 %v2722_v8 }
 0x396   : > { %1692 = vmatpush1.bf16.msra.mxu0 %v2720_v9 }
 0x397   : > { %1693 = vmatprep.subr.bf16.mxu0 %v2725_v10 }
 0x39a   : > { %1694 = vmatpush1.bf16.msra.mxu0 %v2723_v11 }
 0x39b   : > { %1695 = vmatprep.subr.bf16.mxu0 %v2728_v12 }
 0x39e   : > { %1696 = vmatpush1.bf16.msra.mxu0 %v2726_v13 }
 0x39f   : > { %1697 = vmatprep.subr.bf16.mxu0 %v2731_v14 }
 0x3a2   : > { %1698 = vmatpush1.bf16.msra.mxu0 %v2729_v15 }
 0x3a3   : > { %1699 = vmatprep.subr.bf16.mxu0 %v2734_v17 }
 0x3a6   : > { %1700 = vmatpush1.bf16.msra.mxu0 %v2732_v18 }
 0x3a7   : > { %1701 = vmatprep.subr.bf16.mxu0 %v2737_v20 }
 0x3aa   : > { %1702 = vmatpush1.bf16.msra.mxu0 %v2735_v21 }
 0x3ab   : > { %1703 = vmatprep.subr.bf16.mxu0 %v2740_v23 }
 0x3ae   : > { %1704 = vmatpush1.bf16.msra.mxu0 %v2738_v24 }
 0x3b1   : > { %1706 = vmatmul.mubr.bf16.vlgmr.msra.gmra.mrb[4].mxu0 %v1234_v32 }
 0x484   : > { %v1707_v36 = vpop.f32.mrb[4].mxu0 }
 0x485   : > { %v2401_v37 = vadd.f32 %v1707_v36, %v1305_v31  ;;  %v1709_v38 = vpop.f32.mrb[5].mxu0 }
 0x486   : > { %v2402_v39 = vadd.f32 %v1709_v38, %v1309_v34  ;;  %v1711_v40 = vpop.f32.mrb[6].mxu0 }
 0x487   : > { %v1714_v41 = vmax.f32 %v2401_v37, 0.0  ;;  %v1712_v42 = vpop.f32.mrb[7].mxu0 }
 0x488   : > { %v1715_v43 = vmax.f32 %v2402_v39, 0.0 }
 0x489   : > { %v1716_v46 = vpack.c.bf16 %v1714_v41, %v1714_v41 }
 0x48a   : > { %v1717_v44 = vpack.c.bf16 %v1715_v43, %v1715_v43 }
 0x48c   : > { %1885 = vmatprep.mubr.bf16.mxu1 %v1717_v44 }
 0x48d   : > { %1886 = vmatmul.mubr.bf16.vlgmr.msra.gmra.mrb[12].mxu1 %v1716_v46 }
 0x48e   : > { %2382 = vmatpush3.bf16.msra.mxu1 %v2757_v45  ;;  %2397 = vmatprep.mubr.msk.bf16.mxu1 %vm3057_vm0, %v3056_v0 }
 0x48f   : > { %2383 = vmatprep.subr.bf16.mxu1 %v3056_v0 }
 0x492   : > { %2384 = vmatpush3.bf16.msra.mxu1 %v2758_v47 }
 0x493   : > { %2385 = vmatprep.subr.bf16.mxu1 %v3056_v0 }
 0x496   : > { %2386 = vmatpush3.bf16.msra.mxu1 %v2759_v33 }
 0x497   : > { %2387 = vmatprep.subr.bf16.mxu1 %v3056_v0 }
 0x49a   : > { %2388 = vmatpush3.bf16.msra.mxu1 %v2760_v35 }
 0x49b   : > { %2389 = vmatprep.subr.bf16.mxu1 %v3056_v0 }
 0x49e   : > { %2390 = vmatpush3.bf16.msra.mxu1 %v2761_v48 }
 0x49f   : > { %2391 = vmatprep.subr.bf16.mxu1 %v3056_v0 }
 0x4a2   : > { %2392 = vmatpush3.bf16.msra.mxu1 %v2762_v49 }
 0x4a3   : > { %2393 = vmatprep.subr.bf16.mxu1 %v3056_v0 }
 0x4a6   : > { %2394 = vmatpush3.bf16.msra.mxu1 %v2763_v50 }
 0x4a7   : > { %2395 = vmatprep.subr.bf16.mxu1 %v3056_v0 }
 0x4aa   : > { %2396 = vmatpush3.bf16.msra.mxu1 %v2764_v51 }
 0x560   : > { %v2358_v52 = vpop.f32.mrb[12].mxu1 }
 0x561   : > { %v2359_v54 = vpop.f32.mrb[13].mxu1 }
 0x562   : > { %v2360_v55 = vadd.f32 %v2359_v54, %v2358_v52  ;;  %v2361_v56 = vpop.f32.mrb[14].mxu1 }
 0x563   : > { %v2362_v57 = vpop.f32.mrb[15].mxu1 }
 0x564   : > { %v1888_v58 = vadd.f32 %v2360_v55, %v2310_v53 }
 0x566   : > { %v1893_v59 = vmax.f32 %v1888_v58, 0.0 }
 0x568   : > { %v1894_v60 = vpack.c.bf16 %v1893_v59, %v1893_v59 }
 0x56a   : > { %2398 = vmatmul.mubr.bf16.vlgmr.msra.gmra.mrb[16].mxu1 %v1894_v60 }
 0x63d   : > { %v1993_v0 = vpop.f32.mrb[16].mxu1 }
 0x63e   : > { %v1999_v61 = vpack.c.bf16 %v1993_v0, %v1993_v0  ;;  %v2399_v62 = vpop.f32.mrb[17].mxu1 }
 0x63f   : > { %v1996_v63 = vpop.f32.mrb[18].mxu1 }
 0x640   : > { %2000 = vst [vmem:[%s515_s11] sm:$0xf] %v1999_v61  ;;  %v2400_v1 = vpop.f32.mrb[19].mxu1 }
 0x641   : > { %2976 = shalt.err (!%p2973_p3)
}
 0x642   : > { %s2977_s18 = scalar_lea.hbm %s3471_s29, 64  ;;  %s2981_s30 = scalar_lea.hbm %s3562_s16, 128 }
 0x643   : > { %p2978_p7 = scmp.ne.s32.totalorder %s3471_s29, %s2977_s18  ;;  %p2982_p8 = scmp.lt.u32.totalorder %s3471_s29, %s3562_s16 }
 0x644   : > { %p2983_p0 = scmp.lt.u32.totalorder %s2981_s30, %s2977_s18  ;;  %p2985_p6 = scmp.lt.u32.totalorder %s2977_s18, %s3471_s29 }
 0x645   : > { %p2979_p9 = pnand %p2978_p7, %p3563_p5 }
 0x646   : > { %p2984_p2 = por %p2983_p0, %p2982_p8 }
 0x647   : > { %p2980_p4 = pneg %p2979_p9 }
 0x648   : > { %p2986_p10 = por %p2985_p6, %p2984_p2 }
 0x64a   : > { %p2987_p1 = pnand %p2986_p10, %p2980_p4 }
 0x64c   : > { %2990 = shalt.err (!%p2987_p1)
}
 0x64d   : > { %2433 = dma.vmem_to_hbm [thread:$0]  (%p3563_p5), %s3473_s19, 64, %s3471_s29, %s2002_s27  }
 0x64e PF: > { %s2027_s1 = sand.u32 1, %s3029_s21   ;;  %p3564_p11 = scmp.ne.s32.totalorder %s3550_s10, 0 }
 0x64f   : > { %p3565_p12 = scmp.ge.s32.totalorder %s3041_s24, 2  ;;  %s2028_s15 = scalar_lea.sflag [#allocation4], %s2027_s1 }
 0x651   : > { %p2459_p13 = pnand %p3565_p12, %p3564_p11 }
 0x653   : > { %3024 = dma.done.wait (!%p2459_p13), %s2028_s15, 64  }
 0x654   : > { %3026 = vsyncadd (!%p2459_p13), %s2028_s15, 4294967232  ;;  %p28_p3 = scmp.ge.s32.totalorder %s3313_s25, 4   ;;  %s3566_s21 = smov %s3033_s22 }
 0x655   : > { %s3567_s22 = smov %s3037_s23  ;;  %s3568_s23 = smov %s3324_s20 }
 0x656   : > { %s3569_s24 = smov %s3313_s25  ;;  %30 = sbr.rel (!%p28_p3) target bundleno = 14 (0xe), region = 137 }
 0x65d   :  { %2033 = vsyncpa [#allocation3], 1 }
 0x65e   :  { %2035 = vsyncpa [#allocation3 + $0x1], 1 }
 0x65f   :  { %2036 = vsyncpa [#allocation6], 1 }
 0x660   :  { %2037 = vsyncpa [#allocation9], 1 }
 0x661   :  { %2038 = vsyncpa [#allocation12], 1 }
 0x662   :  { %2039 = vsyncpa [#allocation4], 1 }
 0x663   :  { %2041 = vsyncpa [#allocation4 + $0x1], 1 }

</bundles_post_ra>
